<compile_context>
chip_gen: v6e
topology: v6e:2x2x1
jax: 0.10.0
libtpu: 0.0.40
codegen_flags: <defaults>
</compile_context>

<pallas_src>
import math

import jax
import jax.numpy as jnp
from jax.experimental import pallas as pl
from jax.experimental.pallas import tpu as pltpu


def _softplus(x):
    # numerically stable softplus
    return jnp.maximum(x, 0.0) + jnp.log(1.0 + jnp.exp(-jnp.abs(x)))


def _attentive_fp_kernel(seg_ref, x1_ref, wlg_ref, wlx_ref, bl_ref, wp_ref, bp_ref,
                         wg_ref, bg_ref, out_ref, acc_ref, m_ref, h_ref):
    Gp, F = out_ref.shape
    tile = x1_ref.shape[0]

    LOG2 = jnp.float32(math.log(2.0))
    NEG = jnp.float32(-1e30)
    BIG = jnp.float32(1e30)
    TINY = jnp.float32(1e-20)

    t = pl.program_id(0)                 # 0 = init sweep, 1..T = readout timesteps
    n = pl.program_id(1)                 # node tile within the sweep
    n_last = pl.num_programs(1) - 1
    t_last = pl.num_programs(0) - 1

    @pl.when(jnp.logical_and(t == 0, n == 0))
    def _zero():
        acc_ref[...] = jnp.zeros_like(acc_ref)
        m_ref[...] = jnp.full_like(m_ref, NEG)

    # one-hot membership for this node tile, built in-kernel (no G*V HBM traffic)
    seg = seg_ref[...]                                               # (1, tile) int32, -1 = pad
    gid = jax.lax.broadcasted_iota(jnp.int32, (Gp, tile), 0)
    mask = gid == seg                                                # (Gp, tile) bool
    mt = mask.astype(jnp.bfloat16)                                   # single materialized plane
    validf = (seg >= 0).astype(jnp.float32)                          # (1, tile)

    x1 = x1_ref[...]                                                 # (tile, F+1) bf16, [x | 1]

    @pl.when(t == 0)
    def _init_sweep():
        # g_feats init: dgl.sum_nodes(g, node_feats) as a one-hot MXU matmul
        acc_ref[...] += jnp.dot(mt, x1, preferred_element_type=jnp.float32)

        @pl.when(n == n_last)
        def _fin_init():
            h_ref[...] = acc_ref[:, :F]
            acc_ref[...] = jnp.zeros_like(acc_ref)

    @pl.when(t > 0)
    def _readout_sweep():
        tt = t - 1
        h = h_ref[...]                                               # (Gp, F) f32
        hg = jnp.maximum(h, 0.0)                                     # relu(g_feats)

        # graph half of Linear(2F->1), directly in lane-row orientation: (1, Gp)
        s_row = jax.lax.dot_general(
            wlg_ref[tt], hg.astype(jnp.bfloat16),
            (((1,), (1,)), ((), ())),
            preferred_element_type=jnp.float32) + bl_ref[tt]
        # scatter per-graph scalar to nodes on the MXU (one-hot matmul)
        s_nodes = jnp.dot(s_row.astype(jnp.bfloat16), mt,
                          preferred_element_type=jnp.float32)        # (1, tile)
        # node half of the logit, lane-dense
        zx = jax.lax.dot_general(wlx_ref[tt], x1, (((1,), (1,)), ((), ())),
                                 preferred_element_type=jnp.float32)  # (1, tile)
        # SoftPlus2
        z = _softplus(zx + s_nodes) - LOG2                            # (1, tile)

        # online softmax over the nodes of each graph
        masked = jnp.where(mask, z, NEG)                              # (Gp, tile)
        gmax = jnp.max(masked, axis=-1, keepdims=True)                # (Gp, 1)
        new_m = jnp.maximum(m_ref[...], gmax)                         # (Gp, 1)
        # exact f32 scatter of the running max (each node has exactly one member row)
        node_max = jnp.min(jnp.where(mask, new_m, BIG), axis=0, keepdims=True)  # (1, tile)
        e = jnp.exp(z - node_max) * validf                            # (1, tile)
        scale = jnp.exp(m_ref[...] - new_m)                           # (Gp, 1)

        # fused numerator / denominator: (m * e) @ [x | 1]
        ma = mt * e.astype(jnp.bfloat16)                              # (Gp, tile) bf16
        acc_ref[...] = scale * acc_ref[...] + jnp.dot(
            ma, x1, preferred_element_type=jnp.float32)               # (Gp, F+1)
        m_ref[...] = new_m

        @pl.when(n == n_last)
        def _fin_step():
            denom = acc_ref[:, F:F + 1]                               # (Gp, 1)
            wsum = acc_ref[:, :F] * pl.reciprocal(jnp.maximum(denom, TINY), approx=True)
            # project_nodes commuted with the attention-weighted mean (sum a == 1)
            g_repr = jnp.dot(wsum.astype(jnp.bfloat16), wp_ref[tt],
                             preferred_element_type=jnp.float32) + bp_ref[tt]   # (Gp, F)
            # safe ELU
            context = jnp.where(g_repr > 0.0, g_repr,
                                jnp.exp(jnp.minimum(g_repr, 0.0)) - 1.0)

            # GRUCell(context, h): single fused (Gp,2F)@(2F,4F) gate matmul
            cat = jnp.concatenate([context, h], axis=1).astype(jnp.bfloat16)    # (Gp, 2F)
            gates = jnp.dot(cat, wg_ref[tt],
                            preferred_element_type=jnp.float32) + bg_ref[tt]    # (Gp, 4F)
            r = jax.nn.sigmoid(gates[:, :F])
            u = jax.nn.sigmoid(gates[:, F:2 * F])
            ng = jnp.tanh(gates[:, 2 * F:3 * F] + r * gates[:, 3 * F:4 * F])
            h_new = (1.0 - u) * ng + u * h

            h_ref[...] = h_new
            acc_ref[...] = jnp.zeros_like(acc_ref)
            m_ref[...] = jnp.full_like(m_ref, NEG)

            @pl.when(t == t_last)
            def _write_out():
                out_ref[...] = h_new


def _pack_params(params):
    """Fuse / pad / cast the per-timestep torch-style params for the kernel."""
    T, F = params["wp"].shape[0], params["wp"].shape[1]
    wl = params["wl"]                                   # (T, 1, 2F)
    wlg = wl[:, :, :F]                                  # graph-feature half  (T, 1, F)
    wlx = wl[:, :, F:]                                  # node-feature half   (T, 1, F)
    wlx_pad = jnp.concatenate([wlx, jnp.zeros((T, 1, 1), wlx.dtype)], axis=2)  # (T,1,F+1)

    wih, whh = params["wih"], params["whh"]             # (T, F, 3F) each
    bih, bhh = params["bih"], params["bhh"]             # (T, 1, 3F) each
    zeros = jnp.zeros((T, F, F), jnp.float32)
    # gate columns: [r | z | n_in | n_hid]; rows: [context-weights ; hidden-weights]
    top = jnp.concatenate([wih[:, :, :2 * F], wih[:, :, 2 * F:], zeros], axis=2)  # (T,F,4F)
    bot = jnp.concatenate([whh[:, :, :2 * F], zeros, whh[:, :, 2 * F:]], axis=2)  # (T,F,4F)
    w_gru = jnp.concatenate([top, bot], axis=1)                                   # (T,2F,4F)
    b_gru = jnp.concatenate([bih[:, :, :2 * F] + bhh[:, :, :2 * F],
                             bih[:, :, 2 * F:], bhh[:, :, 2 * F:]], axis=2)       # (T,1,4F)

    return {
        "wlg": wlg.astype(jnp.bfloat16),        # (T, 1, F)
        "wlx": wlx_pad.astype(jnp.bfloat16),    # (T, 1, F+1)
        "bl": params["bl"].astype(jnp.float32), # (T, 1, 1)
        "wp": params["wp"].astype(jnp.bfloat16),# (T, F, F)
        "bp": params["bp"].astype(jnp.float32), # (T, 1, F)
        "wg": w_gru.astype(jnp.bfloat16),       # (T, 2F, 4F)
        "bg": b_gru.astype(jnp.float32),        # (T, 1, 4F)
    }


def _derive_vmem_limit_bytes(tile, Gp, F, packed):
    """Generation-aware VMEM limit from the actual working set (not hardcoded)."""
    weight_bytes = sum(int(a.size) * a.dtype.itemsize for a in packed.values())
    stream_bytes = 2 * (tile * (F + 1) * 2 + tile * 4)     # double-buffered x1 + seg tiles
    plane_bytes = Gp * tile * 24                           # transient (Gp, tile) temporaries
    scratch_bytes = Gp * (2 * F + 2) * 4 + Gp * F * 4      # acc + m + h + out block
    working = weight_bytes + stream_bytes + plane_bytes + scratch_bytes
    cap = None
    try:
        cap = getattr(pltpu.get_tpu_info(), "vmem_capacity_bytes", None)
    except Exception:
        cap = None
    if not cap or cap <= 0:
        cap = 64 * 1024 * 1024                             # v7x per-TC VMEM (smallest gen)
    want = 2 * working + (4 << 20)
    return int(max(16 << 20, min(want, int(cap * 0.75))))


def attentive_fp_readout(node_feats, segment_ids, num_graphs, params, max_node_tile=2048):
    """node_feats: (V, F) f32; segment_ids: (V,) int32 node->graph; returns (G, F) f32."""
    V, F = node_feats.shape
    G = num_graphs
    T = params["wl"].shape[0]
    assert T >= 1
    assert max_node_tile % 128 == 0

    if V <= max_node_tile:
        tile = max(128, ((V + 127) // 128) * 128)
        Vp = tile
    else:
        tile = max_node_tile
        Vp = ((V + tile - 1) // tile) * tile
    n_tiles = Vp // tile
    Gp = max(8, ((G + 7) // 8) * 8)

    # node features with an appended ones column (folds the softmax denominator
    # into the same one-hot matmul); padded rows are zero and seg = -1.
    x1 = jnp.zeros((Vp, F + 1), jnp.bfloat16)
    x1 = x1.at[:V, :F].set(node_feats.astype(jnp.bfloat16))
    x1 = x1.at[:V, F].set(1.0)
    seg = jnp.full((1, Vp), -1, jnp.int32).at[0, :V].set(segment_ids.astype(jnp.int32))

    p = _pack_params(params)
    weights = (p["wlg"], p["wlx"], p["bl"], p["wp"], p["bp"], p["wg"], p["bg"])

    grid = (T + 1, n_tiles)
    in_specs = [
        pl.BlockSpec((1, tile), lambda t, n: (0, n)),          # segment ids
        pl.BlockSpec((tile, F + 1), lambda t, n: (n, 0)),      # [x | 1] tile
    ] + [pl.BlockSpec(w.shape, lambda t, n: (0, 0, 0)) for w in weights]
    out_spec = pl.BlockSpec((Gp, F), lambda t, n: (0, 0))
    scratch = [
        pltpu.VMEM((Gp, F + 1), jnp.float32),                  # online acc [sum e*x | sum e]
        pltpu.VMEM((Gp, 1), jnp.float32),                      # running per-graph max
        pltpu.VMEM((Gp, F), jnp.float32),                      # g_feats (GRU hidden)
    ]

    limit = _derive_vmem_limit_bytes(tile, Gp, F, p)

    out = pl.pallas_call(
        _attentive_fp_kernel,
        out_shape=jax.ShapeDtypeStruct((Gp, F), jnp.float32),
        grid_spec=pltpu.PrefetchScalarGridSpec(
            num_scalar_prefetch=0,
            grid=grid,
            in_specs=in_specs,
            out_specs=out_spec,
            scratch_shapes=scratch),
        compiler_params=pltpu.CompilerParams(
            dimension_semantics=("arbitrary", "arbitrary"),
            vmem_limit_bytes=limit),
    )(seg, x1, *weights)
    return out[:G]


def init_params(key, feat_size, num_timesteps):
    F = feat_size
    ks = jax.random.split(key, 8)

    def nrm(k, shape, scale=0.1):
        return (scale * jax.random.normal(k, shape)).astype(jnp.float32)

    return {
        # compute_logits: Linear(2F, 1) (+ SoftPlus2)
        "wl": nrm(ks[0], (num_timesteps, 1, 2 * F)),
        "bl": nrm(ks[1], (num_timesteps, 1, 1)),
        # project_nodes: Linear(F, F)  ((in, out) layout)
        "wp": nrm(ks[2], (num_timesteps, F, F)),
        "bp": nrm(ks[3], (num_timesteps, 1, F)),
        # GRUCell(F, F): W_ih^T, W_hh^T with column blocks [r | z | n]
        "wih": nrm(ks[4], (num_timesteps, F, 3 * F)),
        "whh": nrm(ks[5], (num_timesteps, F, 3 * F)),
        "bih": nrm(ks[6], (num_timesteps, 1, 3 * F)),
        "bhh": nrm(ks[7], (num_timesteps, 1, 3 * F)),
    }


def reference(node_feats, segment_ids, num_graphs, params):
    """Pure-JAX (f32) replica of AttentiveFPReadout.forward for validation."""
    F = node_feats.shape[1]
    T = params["wl"].shape[0]
    h = jax.ops.segment_sum(node_feats, segment_ids, num_segments=num_graphs)
    for t in range(T):
        wl, bl = params["wl"][t], params["bl"][t]
        wp, bp = params["wp"][t], params["bp"][t]
        wih, whh = params["wih"][t], params["whh"][t]
        bih, bhh = params["bih"][t], params["bhh"][t]

        bcast = jnp.maximum(h, 0.0)[segment_ids]                         # (V, F)
        cat = jnp.concatenate([bcast, node_feats], axis=1)               # (V, 2F)
        z = cat @ wl[0] + bl[0, 0]                                       # (V,)
        z = jax.nn.softplus(z) - jnp.log(2.0)

        zmax = jax.ops.segment_max(z, segment_ids, num_segments=num_graphs)
        e = jnp.exp(z - zmax[segment_ids])
        s = jax.ops.segment_sum(e, segment_ids, num_segments=num_graphs)
        a = e / s[segment_ids]                                           # (V,)

        hv = node_feats @ wp + bp                                        # (V, F)
        g_repr = jax.ops.segment_sum(a[:, None] * hv, segment_ids,
                                     num_segments=num_graphs)            # (G, F)
        context = jax.nn.elu(g_repr)

        gi = context @ wih + bih
        gh = h @ whh + bhh
        r = jax.nn.sigmoid(gi[:, :F] + gh[:, :F])
        u = jax.nn.sigmoid(gi[:, F:2 * F] + gh[:, F:2 * F])
        n = jnp.tanh(gi[:, 2 * F:] + r * gh[:, 2 * F:])
        h = (1.0 - u) * n + u * h
    return h


if __name__ == "__main__":
    key = jax.random.PRNGKey(0)
    k_feat, k_param, k_feat2, k_seg2 = jax.random.split(key, 4)

    F, T = 32, 2
    params = init_params(k_param, F, T)

    # --- test 1: single node tile (batch of 2 small graphs) ---
    V, G = 16, 2
    node_feats = jax.random.normal(k_feat, (V, F), dtype=jnp.float32)
    segment_ids = jnp.array([0] * 7 + [1] * 9, dtype=jnp.int32)

    out = attentive_fp_readout(node_feats, segment_ids, G, params)
    out = jax.block_until_ready(out)
    ref = reference(node_feats, segment_ids, G, params)
    assert out.shape == (G, F)
    err = float(jnp.max(jnp.abs(out - ref)))
    assert jnp.allclose(out, ref, atol=5e-2, rtol=5e-2), f"test1 mismatch, max abs err {err}"

    # --- test 2: multi-tile grid (exercises the online-softmax node sweep) ---
    V2, G2 = 600, 4
    node_feats2 = jax.random.normal(k_feat2, (V2, F), dtype=jnp.float32)
    segment_ids2 = jax.random.randint(k_seg2, (V2,), 0, G2, dtype=jnp.int32)

    out2 = attentive_fp_readout(node_feats2, segment_ids2, G2, params, max_node_tile=256)
    out2 = jax.block_until_ready(out2)
    ref2 = reference(node_feats2, segment_ids2, G2, params)
    assert out2.shape == (G2, F)
    err2 = float(jnp.max(jnp.abs(out2 - ref2)))
    assert jnp.allclose(out2, ref2, atol=5e-2, rtol=5e-2), f"test2 mismatch, max abs err {err2}"

    print("KERNEL_OK")
</pallas_src>

<mosaic_0001>
module attributes {stable_mosaic.version = 11 : i64} {
  func.func @_attentive_fp_kernel(%arg0: i32, %arg1: i32, %arg2: memref<1x128xi32, #tpu.memory_space<vmem>>, %arg3: memref<128x33xbf16, #tpu.memory_space<vmem>>, %arg4: memref<2x1x32xbf16, #tpu.memory_space<vmem>>, %arg5: memref<2x1x33xbf16, #tpu.memory_space<vmem>>, %arg6: memref<2x1x1xf32, #tpu.memory_space<vmem>>, %arg7: memref<2x32x32xbf16, #tpu.memory_space<vmem>>, %arg8: memref<2x1x32xf32, #tpu.memory_space<vmem>>, %arg9: memref<2x64x128xbf16, #tpu.memory_space<vmem>>, %arg10: memref<2x1x128xf32, #tpu.memory_space<vmem>>, %arg11: memref<8x32xf32, #tpu.memory_space<vmem>>, %arg12: memref<8x33xf32, #tpu.memory_space<vmem>>, %arg13: memref<8x1xf32, #tpu.memory_space<vmem>>, %arg14: memref<8x32xf32, #tpu.memory_space<vmem>>) attributes {dimension_semantics = [#tpu.dimension_semantics<arbitrary>, #tpu.dimension_semantics<arbitrary>], iteration_bounds = array<i64: 3, 1>, scalar_prefetch = 0 : i64, scratch_operands = 3 : i64, tpu.core_type = #tpu.core_type<tc>, window_params = [{transform_indices = @transform_0, window_bounds = array<i64: 1, 128>}, {transform_indices = @transform_1, window_bounds = array<i64: 128, 33>}, {pipeline_mode = #tpu.pipeline_mode<synchronous>, transform_indices = @transform_2, window_bounds = array<i64: 2, 1, 32>}, {pipeline_mode = #tpu.pipeline_mode<synchronous>, transform_indices = @transform_3, window_bounds = array<i64: 2, 1, 33>}, {pipeline_mode = #tpu.pipeline_mode<synchronous>, transform_indices = @transform_4, window_bounds = array<i64: 2, 1, 1>}, {pipeline_mode = #tpu.pipeline_mode<synchronous>, transform_indices = @transform_5, window_bounds = array<i64: 2, 32, 32>}, {pipeline_mode = #tpu.pipeline_mode<synchronous>, transform_indices = @transform_6, window_bounds = array<i64: 2, 1, 32>}, {pipeline_mode = #tpu.pipeline_mode<synchronous>, transform_indices = @transform_7, window_bounds = array<i64: 2, 64, 128>}, {pipeline_mode = #tpu.pipeline_mode<synchronous>, transform_indices = @transform_8, window_bounds = array<i64: 2, 1, 128>}, {pipeline_mode = #tpu.pipeline_mode<synchronous>, transform_indices = @transform_9, window_bounds = array<i64: 8, 32>}]} {
    %c0_i32 = arith.constant 0 : i32
    %0 = arith.cmpi eq, %arg0, %c0_i32 : i32
    %c0_i32_0 = arith.constant 0 : i32
    %1 = arith.cmpi eq, %arg1, %c0_i32_0 : i32
    %2 = arith.andi %0, %1 : i1
    %3 = arith.extui %2 : i1 to i32
    %cst = arith.constant -1.000000e+30 : f32
    %c0_i32_1 = arith.constant 0 : i32
    %4 = arith.cmpi ne, %3, %c0_i32_1 : i32
    scf.if %4 {
      %cst_14 = arith.constant 0.000000e+00 : f32
      %23 = vector.broadcast %cst_14 : f32 to vector<8x33xf32>
      %c0_15 = arith.constant 0 : index
      %c0_16 = arith.constant 0 : index
      %24 = vector.load %arg12[%c0_15, %c0_16] : memref<8x33xf32, #tpu.memory_space<vmem>>, vector<8x33xf32>
      tpu.vector_store %arg12[%c0_15, %c0_16], %23 {strides = array<i32>} : memref<8x33xf32, #tpu.memory_space<vmem>>, vector<8x33xf32>,
      %25 = vector.broadcast %cst : f32 to vector<8x1xf32>
      %c0_17 = arith.constant 0 : index
      %c0_18 = arith.constant 0 : index
      %26 = vector.load %arg13[%c0_17, %c0_18] : memref<8x1xf32, #tpu.memory_space<vmem>>, vector<8x1xf32>
      tpu.vector_store %arg13[%c0_17, %c0_18], %25 {strides = array<i32>} : memref<8x1xf32, #tpu.memory_space<vmem>>, vector<8x1xf32>,
    } else {
    }
    %c0 = arith.constant 0 : index
    %c0_2 = arith.constant 0 : index
    %5 = vector.load %arg2[%c0, %c0_2] : memref<1x128xi32, #tpu.memory_space<vmem>>, vector<1x128xi32>
    %6 = tpu.iota {dimensions = array<i32: 0>} : vector<8x128xi32>
    %7 = vector.broadcast %5 : vector<1x128xi32> to vector<8x128xi32>
    %8 = arith.cmpi eq, %6, %7 : vector<8x128xi32>
    %9 = arith.extui %8 : vector<8x128xi1> to vector<8x128xi32>
    %10 = arith.sitofp %9 : vector<8x128xi32> to vector<8x128xf32>
    %11 = arith.truncf %10 : vector<8x128xf32> to vector<8x128xbf16>
    %c0_i32_3 = arith.constant 0 : i32
    %12 = vector.broadcast %c0_i32_3 : i32 to vector<1x128xi32>
    %13 = arith.cmpi sge, %5, %12 : vector<1x128xi32>
    %14 = arith.extui %13 : vector<1x128xi1> to vector<1x128xi32>
    %15 = arith.sitofp %14 : vector<1x128xi32> to vector<1x128xf32>
    %c0_4 = arith.constant 0 : index
    %c0_5 = arith.constant 0 : index
    %16 = vector.load %arg3[%c0_4, %c0_5] : memref<128x33xbf16, #tpu.memory_space<vmem>>, vector<128x33xbf16>
    %c0_i32_6 = arith.constant 0 : i32
    %17 = arith.cmpi eq, %arg0, %c0_i32_6 : i32
    %18 = arith.extui %17 : i1 to i32
    %c0_i32_7 = arith.constant 0 : i32
    %19 = arith.cmpi ne, %18, %c0_i32_7 : i32
    scf.if %19 {
      %c0_14 = arith.constant 0 : index
      %c0_15 = arith.constant 0 : index
      %23 = vector.load %arg12[%c0_14, %c0_15] : memref<8x33xf32, #tpu.memory_space<vmem>>, vector<8x33xf32>
      %cst_16 = arith.constant dense<0.000000e+00> : vector<8x33xf32>
      %24 = tpu.matmul %11, %16, %cst_16 {dimension_numbers = #tpu.dot_dimension_numbers<[1], [0], [0], [1], [0, 0, 1, 1], [], []>} : vector<8x128xbf16>, vector<128x33xbf16>, vector<8x33xf32> -> vector<8x33xf32>
      %25 = arith.addf %23, %24 : vector<8x33xf32>
      %c0_17 = arith.constant 0 : index
      %c0_18 = arith.constant 0 : index
      %26 = vector.load %arg12[%c0_17, %c0_18] : memref<8x33xf32, #tpu.memory_space<vmem>>, vector<8x33xf32>
      tpu.vector_store %arg12[%c0_17, %c0_18], %25 {strides = array<i32>} : memref<8x33xf32, #tpu.memory_space<vmem>>, vector<8x33xf32>,
      %c0_i32_19 = arith.constant 0 : i32
      %27 = arith.cmpi eq, %arg1, %c0_i32_19 : i32
      %28 = arith.extui %27 : i1 to i32
      %c0_i32_20 = arith.constant 0 : i32
      %29 = arith.cmpi ne, %28, %c0_i32_20 : i32
      scf.if %29 {
        %c0_21 = arith.constant 0 : index
        %c0_22 = arith.constant 0 : index
        %30 = vector.load %arg12[%c0_21, %c0_22] : memref<8x33xf32, #tpu.memory_space<vmem>>, vector<8x32xf32>
        %c0_23 = arith.constant 0 : index
        %c0_24 = arith.constant 0 : index
        %31 = vector.load %arg14[%c0_23, %c0_24] : memref<8x32xf32, #tpu.memory_space<vmem>>, vector<8x32xf32>
        tpu.vector_store %arg14[%c0_23, %c0_24], %30 {strides = array<i32>} : memref<8x32xf32, #tpu.memory_space<vmem>>, vector<8x32xf32>,
        %cst_25 = arith.constant 0.000000e+00 : f32
        %32 = vector.broadcast %cst_25 : f32 to vector<8x33xf32>
        %c0_26 = arith.constant 0 : index
        %c0_27 = arith.constant 0 : index
        %33 = vector.load %arg12[%c0_26, %c0_27] : memref<8x33xf32, #tpu.memory_space<vmem>>, vector<8x33xf32>
        tpu.vector_store %arg12[%c0_26, %c0_27], %32 {strides = array<i32>} : memref<8x33xf32, #tpu.memory_space<vmem>>, vector<8x33xf32>,
      } else {
      }
    } else {
    }
    %c0_i32_8 = arith.constant 0 : i32
    %20 = arith.cmpi sgt, %arg0, %c0_i32_8 : i32
    %21 = arith.extui %20 : i1 to i32
    %cst_9 = arith.constant 0.693147182 : f32
    %cst_10 = arith.constant -1.000000e+30 : f32
    %cst_11 = arith.constant 1.000000e+30 : f32
    %cst_12 = arith.constant 9.99999968E-21 : f32
    %c0_i32_13 = arith.constant 0 : i32
    %22 = arith.cmpi ne, %21, %c0_i32_13 : i32
    scf.if %22 {
      %c1_i32 = arith.constant 1 : i32
      %23 = arith.subi %arg0, %c1_i32 : i32
      %c0_14 = arith.constant 0 : index
      %c0_15 = arith.constant 0 : index
      %24 = vector.load %arg14[%c0_14, %c0_15] : memref<8x32xf32, #tpu.memory_space<vmem>>, vector<8x32xf32>
      %cst_16 = arith.constant 0.000000e+00 : f32
      %25 = vector.broadcast %cst_16 : f32 to vector<8x32xf32>
      %26 = arith.maximumf %24, %25 : vector<8x32xf32>
      %27 = arith.index_cast %23 : i32 to index
      %c0_17 = arith.constant 0 : index
      %c0_18 = arith.constant 0 : index
      %28 = vector.load %arg4[%27, %c0_17, %c0_18] : memref<2x1x32xbf16, #tpu.memory_space<vmem>>, vector<1x1x32xbf16>
      %29 = vector.shape_cast %28 : vector<1x1x32xbf16> to vector<1x32xbf16>
      %30 = arith.truncf %26 : vector<8x32xf32> to vector<8x32xbf16>
      %cst_19 = arith.constant dense<0.000000e+00> : vector<1x8xf32>
      %31 = tpu.matmul %29, %30, %cst_19 {dimension_numbers = #tpu.dot_dimension_numbers<[1], [1], [0], [0], [0, 0, 1, 0], [], []>} : vector<1x32xbf16>, vector<8x32xbf16>, vector<1x8xf32> -> vector<1x8xf32>
      %32 = arith.index_cast %23 : i32 to index
      %c0_20 = arith.constant 0 : index
      %c0_21 = arith.constant 0 : index
      %33 = vector.load %arg6[%32, %c0_20, %c0_21] : memref<2x1x1xf32, #tpu.memory_space<vmem>>, vector<1x1x1xf32>
      %34 = vector.shape_cast %33 : vector<1x1x1xf32> to vector<1x1xf32>
      %35 = vector.broadcast %34 : vector<1x1xf32> to vector<1x8xf32>
      %36 = arith.addf %31, %35 : vector<1x8xf32>
      %37 = arith.truncf %36 : vector<1x8xf32> to vector<1x8xbf16>
      %cst_22 = arith.constant dense<0.000000e+00> : vector<1x128xf32>
      %38 = tpu.matmul %37, %11, %cst_22 {dimension_numbers = #tpu.dot_dimension_numbers<[1], [0], [0], [1], [0, 0, 1, 1], [], []>} : vector<1x8xbf16>, vector<8x128xbf16>, vector<1x128xf32> -> vector<1x128xf32>
      %39 = arith.index_cast %23 : i32 to index
      %c0_23 = arith.constant 0 : index
      %c0_24 = arith.constant 0 : index
      %40 = vector.load %arg5[%39, %c0_23, %c0_24] : memref<2x1x33xbf16, #tpu.memory_space<vmem>>, vector<1x1x33xbf16>
      %41 = vector.shape_cast %40 : vector<1x1x33xbf16> to vector<1x33xbf16>
      %cst_25 = arith.constant dense<0.000000e+00> : vector<1x128xf32>
      %42 = tpu.matmul %41, %16, %cst_25 {dimension_numbers = #tpu.dot_dimension_numbers<[1], [1], [0], [0], [0, 0, 1, 0], [], []>} : vector<1x33xbf16>, vector<128x33xbf16>, vector<1x128xf32> -> vector<1x128xf32>
      %43 = arith.addf %42, %38 : vector<1x128xf32>
      %cst_26 = arith.constant 0.000000e+00 : f32
      %44 = vector.broadcast %cst_26 : f32 to vector<1x128xf32>
      %45 = arith.maximumf %43, %44 : vector<1x128xf32>
      %46 = math.absf %43 : vector<1x128xf32>
      %cst_27 = arith.constant 0.000000e+00 : f32
      %47 = vector.broadcast %cst_27 : f32 to vector<1x128xf32>
      %48 = arith.subf %47, %46 : vector<1x128xf32>
      %49 = math.exp %48 : vector<1x128xf32>
      %cst_28 = arith.constant 1.000000e+00 : f32
      %50 = vector.broadcast %cst_28 : f32 to vector<1x128xf32>
      %51 = arith.addf %50, %49 : vector<1x128xf32>
      %52 = math.log %51 : vector<1x128xf32>
      %53 = arith.addf %45, %52 : vector<1x128xf32>
      %54 = vector.broadcast %cst_9 : f32 to vector<1x128xf32>
      %55 = arith.subf %53, %54 : vector<1x128xf32>
      %56 = vector.shape_cast %55 : vector<1x128xf32> to vector<1x128xf32>
      %57 = vector.broadcast %56 : vector<1x128xf32> to vector<8x128xf32>
      %58 = vector.broadcast %cst_10 : f32 to vector<8x128xf32>
      %59 = arith.select %8, %57, %58 : vector<8x128xi1>, vector<8x128xf32>
      %cst_29 = arith.constant dense<0xFF800000> : vector<8xf32>
      %60 = vector.multi_reduction <maximumf>, %59, %cst_29 [1] : vector<8x128xf32> to vector<8xf32>
      %61 = vector.shape_cast %60 : vector<8xf32> to vector<8x1xf32>
      %c0_30 = arith.constant 0 : index
      %c0_31 = arith.constant 0 : index
      %62 = vector.load %arg13[%c0_30, %c0_31] : memref<8x1xf32, #tpu.memory_space<vmem>>, vector<8x1xf32>
      %63 = arith.maximumf %62, %61 : vector<8x1xf32>
      %64 = vector.shape_cast %63 : vector<8x1xf32> to vector<8x1xf32>
      %65 = vector.broadcast %64 : vector<8x1xf32> to vector<8x128xf32>
      %66 = vector.broadcast %cst_11 : f32 to vector<8x128xf32>
      %67 = arith.select %8, %65, %66 : vector<8x128xi1>, vector<8x128xf32>
      %cst_32 = arith.constant dense<0x7F800000> : vector<128xf32>
      %68 = vector.multi_reduction <minimumf>, %67, %cst_32 [0] : vector<8x128xf32> to vector<128xf32>
      %69 = vector.shape_cast %68 : vector<128xf32> to vector<1x128xf32>
      %70 = arith.subf %55, %69 : vector<1x128xf32>
      %71 = math.exp %70 : vector<1x128xf32>
      %72 = arith.mulf %71, %15 : vector<1x128xf32>
      %c0_33 = arith.constant 0 : index
      %c0_34 = arith.constant 0 : index
      %73 = vector.load %arg13[%c0_33, %c0_34] : memref<8x1xf32, #tpu.memory_space<vmem>>, vector<8x1xf32>
      %74 = arith.subf %73, %63 : vector<8x1xf32>
      %75 = math.exp %74 : vector<8x1xf32>
      %76 = arith.truncf %72 : vector<1x128xf32> to vector<1x128xbf16>
      %77 = vector.broadcast %76 : vector<1x128xbf16> to vector<8x128xbf16>
      %78 = arith.mulf %11, %77 : vector<8x128xbf16>
      %c0_35 = arith.constant 0 : index
      %c0_36 = arith.constant 0 : index
      %79 = vector.load %arg12[%c0_35, %c0_36] : memref<8x33xf32, #tpu.memory_space<vmem>>, vector<8x33xf32>
      %80 = vector.broadcast %75 : vector<8x1xf32> to vector<8x33xf32>
      %81 = arith.mulf %80, %79 : vector<8x33xf32>
      %cst_37 = arith.constant dense<0.000000e+00> : vector<8x33xf32>
      %82 = tpu.matmul %78, %16, %cst_37 {dimension_numbers = #tpu.dot_dimension_numbers<[1], [0], [0], [1], [0, 0, 1, 1], [], []>} : vector<8x128xbf16>, vector<128x33xbf16>, vector<8x33xf32> -> vector<8x33xf32>
      %83 = arith.addf %81, %82 : vector<8x33xf32>
      %c0_38 = arith.constant 0 : index
      %c0_39 = arith.constant 0 : index
      %84 = vector.load %arg12[%c0_38, %c0_39] : memref<8x33xf32, #tpu.memory_space<vmem>>, vector<8x33xf32>
      tpu.vector_store %arg12[%c0_38, %c0_39], %83 {strides = array<i32>} : memref<8x33xf32, #tpu.memory_space<vmem>>, vector<8x33xf32>,
      %c0_40 = arith.constant 0 : index
      %c0_41 = arith.constant 0 : index
      %85 = vector.load %arg13[%c0_40, %c0_41] : memref<8x1xf32, #tpu.memory_space<vmem>>, vector<8x1xf32>
      tpu.vector_store %arg13[%c0_40, %c0_41], %63 {strides = array<i32>} : memref<8x1xf32, #tpu.memory_space<vmem>>, vector<8x1xf32>,
      %c0_i32_42 = arith.constant 0 : i32
      %86 = arith.cmpi eq, %arg1, %c0_i32_42 : i32
      %87 = arith.extui %86 : i1 to i32
      %c0_i32_43 = arith.constant 0 : i32
      %88 = arith.cmpi ne, %87, %c0_i32_43 : i32
      scf.if %88 {
        %c0_44 = arith.constant 0 : index
        %c32 = arith.constant 32 : index
        %89 = vector.load %arg12[%c0_44, %c32] : memref<8x33xf32, #tpu.memory_space<vmem>>, vector<8x1xf32>
        %c0_45 = arith.constant 0 : index
        %c0_46 = arith.constant 0 : index
        %90 = vector.load %arg12[%c0_45, %c0_46] : memref<8x33xf32, #tpu.memory_space<vmem>>, vector<8x32xf32>
        %91 = vector.broadcast %cst_12 : f32 to vector<8x1xf32>
        %92 = arith.maximumf %89, %91 : vector<8x1xf32>
        %93 = tpu.reciprocal %92 {approx = true} : vector<8x1xf32> -> vector<8x1xf32>
        %94 = vector.broadcast %93 : vector<8x1xf32> to vector<8x32xf32>
        %95 = arith.mulf %90, %94 : vector<8x32xf32>
        %96 = arith.truncf %95 : vector<8x32xf32> to vector<8x32xbf16>
        %97 = arith.index_cast %23 : i32 to index
        %c0_47 = arith.constant 0 : index
        %c0_48 = arith.constant 0 : index
        %98 = vector.load %arg7[%97, %c0_47, %c0_48] : memref<2x32x32xbf16, #tpu.memory_space<vmem>>, vector<1x32x32xbf16>
        %99 = vector.shape_cast %98 : vector<1x32x32xbf16> to vector<32x32xbf16>
        %cst_49 = arith.constant dense<0.000000e+00> : vector<8x32xf32>
        %100 = tpu.matmul %96, %99, %cst_49 {dimension_numbers = #tpu.dot_dimension_numbers<[1], [0], [0], [1], [0, 0, 1, 1], [], []>} : vector<8x32xbf16>, vector<32x32xbf16>, vector<8x32xf32> -> vector<8x32xf32>
        %101 = arith.index_cast %23 : i32 to index
        %c0_50 = arith.constant 0 : index
        %c0_51 = arith.constant 0 : index
        %102 = vector.load %arg8[%101, %c0_50, %c0_51] : memref<2x1x32xf32, #tpu.memory_space<vmem>>, vector<1x1x32xf32>
        %103 = vector.shape_cast %102 : vector<1x1x32xf32> to vector<1x32xf32>
        %104 = vector.broadcast %103 : vector<1x32xf32> to vector<8x32xf32>
        %105 = arith.addf %100, %104 : vector<8x32xf32>
        %cst_52 = arith.constant 0.000000e+00 : f32
        %106 = vector.broadcast %cst_52 : f32 to vector<8x32xf32>
        %107 = arith.cmpf ogt, %105, %106 : vector<8x32xf32>
        %cst_53 = arith.constant 0.000000e+00 : f32
        %108 = vector.broadcast %cst_53 : f32 to vector<8x32xf32>
        %109 = arith.minimumf %105, %108 : vector<8x32xf32>
        %110 = math.exp %109 : vector<8x32xf32>
        %cst_54 = arith.constant 1.000000e+00 : f32
        %111 = vector.broadcast %cst_54 : f32 to vector<8x32xf32>
        %112 = arith.subf %110, %111 : vector<8x32xf32>
        %113 = arith.select %107, %105, %112 : vector<8x32xi1>, vector<8x32xf32>
        %114 = tpu.concatenate %113, %24 in 1 : vector<8x32xf32>, vector<8x32xf32> -> vector<8x64xf32>
        %115 = arith.truncf %114 : vector<8x64xf32> to vector<8x64xbf16>
        %116 = arith.index_cast %23 : i32 to index
        %c0_55 = arith.constant 0 : index
        %c0_56 = arith.constant 0 : index
        %117 = vector.load %arg9[%116, %c0_55, %c0_56] : memref<2x64x128xbf16, #tpu.memory_space<vmem>>, vector<1x64x128xbf16>
        %118 = vector.shape_cast %117 : vector<1x64x128xbf16> to vector<64x128xbf16>
        %cst_57 = arith.constant dense<0.000000e+00> : vector<8x128xf32>
        %119 = tpu.matmul %115, %118, %cst_57 {dimension_numbers = #tpu.dot_dimension_numbers<[1], [0], [0], [1], [0, 0, 1, 1], [], []>} : vector<8x64xbf16>, vector<64x128xbf16>, vector<8x128xf32> -> vector<8x128xf32>
        %120 = arith.index_cast %23 : i32 to index
        %c0_58 = arith.constant 0 : index
        %c0_59 = arith.constant 0 : index
        %121 = vector.load %arg10[%120, %c0_58, %c0_59] : memref<2x1x128xf32, #tpu.memory_space<vmem>>, vector<1x1x128xf32>
        %122 = vector.shape_cast %121 : vector<1x1x128xf32> to vector<1x128xf32>
        %123 = vector.broadcast %122 : vector<1x128xf32> to vector<8x128xf32>
        %124 = arith.addf %119, %123 : vector<8x128xf32>
        %125 = vector.extract_strided_slice %124 {offsets = [0, 0], sizes = [8, 32], strides = [1, 1]} : vector<8x128xf32> to vector<8x32xf32>
        %126 = arith.negf %125 : vector<8x32xf32>
        %127 = math.exp %126 : vector<8x32xf32>
        %cst_60 = arith.constant 1.000000e+00 : f32
        %128 = vector.broadcast %cst_60 : f32 to vector<8x32xf32>
        %129 = arith.addf %128, %127 : vector<8x32xf32>
        %130 = arith.divf %128, %129 : vector<8x32xf32>
        %131 = vector.extract_strided_slice %124 {offsets = [0, 32], sizes = [8, 32], strides = [1, 1]} : vector<8x128xf32> to vector<8x32xf32>
        %132 = arith.negf %131 : vector<8x32xf32>
        %133 = math.exp %132 : vector<8x32xf32>
        %cst_61 = arith.constant 1.000000e+00 : f32
        %134 = vector.broadcast %cst_61 : f32 to vector<8x32xf32>
        %135 = arith.addf %134, %133 : vector<8x32xf32>
        %136 = arith.divf %134, %135 : vector<8x32xf32>
        %137 = vector.extract_strided_slice %124 {offsets = [0, 64], sizes = [8, 32], strides = [1, 1]} : vector<8x128xf32> to vector<8x32xf32>
        %138 = vector.extract_strided_slice %124 {offsets = [0, 96], sizes = [8, 32], strides = [1, 1]} : vector<8x128xf32> to vector<8x32xf32>
        %139 = arith.mulf %130, %138 : vector<8x32xf32>
        %140 = arith.addf %137, %139 : vector<8x32xf32>
        %141 = math.tanh %140 : vector<8x32xf32>
        %cst_62 = arith.constant 1.000000e+00 : f32
        %142 = vector.broadcast %cst_62 : f32 to vector<8x32xf32>
        %143 = arith.subf %142, %136 : vector<8x32xf32>
        %144 = arith.mulf %143, %141 : vector<8x32xf32>
        %145 = arith.mulf %136, %24 : vector<8x32xf32>
        %146 = arith.addf %144, %145 : vector<8x32xf32>
        %c0_63 = arith.constant 0 : index
        %c0_64 = arith.constant 0 : index
        %147 = vector.load %arg14[%c0_63, %c0_64] : memref<8x32xf32, #tpu.memory_space<vmem>>, vector<8x32xf32>
        tpu.vector_store %arg14[%c0_63, %c0_64], %146 {strides = array<i32>} : memref<8x32xf32, #tpu.memory_space<vmem>>, vector<8x32xf32>,
        %cst_65 = arith.constant 0.000000e+00 : f32
        %148 = vector.broadcast %cst_65 : f32 to vector<8x33xf32>
        %c0_66 = arith.constant 0 : index
        %c0_67 = arith.constant 0 : index
        %149 = vector.load %arg12[%c0_66, %c0_67] : memref<8x33xf32, #tpu.memory_space<vmem>>, vector<8x33xf32>
        tpu.vector_store %arg12[%c0_66, %c0_67], %148 {strides = array<i32>} : memref<8x33xf32, #tpu.memory_space<vmem>>, vector<8x33xf32>,
        %150 = vector.broadcast %cst_10 : f32 to vector<8x1xf32>
        %c0_68 = arith.constant 0 : index
        %c0_69 = arith.constant 0 : index
        %151 = vector.load %arg13[%c0_68, %c0_69] : memref<8x1xf32, #tpu.memory_space<vmem>>, vector<8x1xf32>
        tpu.vector_store %arg13[%c0_68, %c0_69], %150 {strides = array<i32>} : memref<8x1xf32, #tpu.memory_space<vmem>>, vector<8x1xf32>,
        %c2_i32 = arith.constant 2 : i32
        %152 = arith.cmpi eq, %arg0, %c2_i32 : i32
        %153 = arith.extui %152 : i1 to i32
        %c0_i32_70 = arith.constant 0 : i32
        %154 = arith.cmpi ne, %153, %c0_i32_70 : i32
        scf.if %154 {
          %c0_71 = arith.constant 0 : index
          %c0_72 = arith.constant 0 : index
          %155 = vector.load %arg11[%c0_71, %c0_72] : memref<8x32xf32, #tpu.memory_space<vmem>>, vector<8x32xf32>
          tpu.vector_store %arg11[%c0_71, %c0_72], %146 {strides = array<i32>} : memref<8x32xf32, #tpu.memory_space<vmem>>, vector<8x32xf32>,
        } else {
        }
      } else {
      }
    } else {
    }
    return
  }
  func.func @transform_0(%arg0: i32, %arg1: i32) -> (i32, i32) {
    %c0_i32 = arith.constant 0 : i32
    %c0_i32_0 = arith.constant 0 : i32
    return %c0_i32, %arg1 : i32, i32
  }
  func.func @transform_1(%arg0: i32, %arg1: i32) -> (i32, i32) {
    %c0_i32 = arith.constant 0 : i32
    %c0_i32_0 = arith.constant 0 : i32
    return %arg1, %c0_i32 : i32, i32
  }
  func.func @transform_2(%arg0: i32, %arg1: i32) -> (i32, i32, i32) {
    %c0_i32 = arith.constant 0 : i32
    %c0_i32_0 = arith.constant 0 : i32
    %c0_i32_1 = arith.constant 0 : i32
    %c0_i32_2 = arith.constant 0 : i32
    return %c0_i32, %c0_i32_0, %c0_i32_1 : i32, i32, i32
  }
  func.func @transform_3(%arg0: i32, %arg1: i32) -> (i32, i32, i32) {
    %c0_i32 = arith.constant 0 : i32
    %c0_i32_0 = arith.constant 0 : i32
    %c0_i32_1 = arith.constant 0 : i32
    %c0_i32_2 = arith.constant 0 : i32
    return %c0_i32, %c0_i32_0, %c0_i32_1 : i32, i32, i32
  }
  func.func @transform_4(%arg0: i32, %arg1: i32) -> (i32, i32, i32) {
    %c0_i32 = arith.constant 0 : i32
    %c0_i32_0 = arith.constant 0 : i32
    %c0_i32_1 = arith.constant 0 : i32
    %c0_i32_2 = arith.constant 0 : i32
    return %c0_i32, %c0_i32_0, %c0_i32_1 : i32, i32, i32
  }
  func.func @transform_5(%arg0: i32, %arg1: i32) -> (i32, i32, i32) {
    %c0_i32 = arith.constant 0 : i32
    %c0_i32_0 = arith.constant 0 : i32
    %c0_i32_1 = arith.constant 0 : i32
    %c0_i32_2 = arith.constant 0 : i32
    return %c0_i32, %c0_i32_0, %c0_i32_1 : i32, i32, i32
  }
  func.func @transform_6(%arg0: i32, %arg1: i32) -> (i32, i32, i32) {
    %c0_i32 = arith.constant 0 : i32
    %c0_i32_0 = arith.constant 0 : i32
    %c0_i32_1 = arith.constant 0 : i32
    %c0_i32_2 = arith.constant 0 : i32
    return %c0_i32, %c0_i32_0, %c0_i32_1 : i32, i32, i32
  }
  func.func @transform_7(%arg0: i32, %arg1: i32) -> (i32, i32, i32) {
    %c0_i32 = arith.constant 0 : i32
    %c0_i32_0 = arith.constant 0 : i32
    %c0_i32_1 = arith.constant 0 : i32
    %c0_i32_2 = arith.constant 0 : i32
    return %c0_i32, %c0_i32_0, %c0_i32_1 : i32, i32, i32
  }
  func.func @transform_8(%arg0: i32, %arg1: i32) -> (i32, i32, i32) {
    %c0_i32 = arith.constant 0 : i32
    %c0_i32_0 = arith.constant 0 : i32
    %c0_i32_1 = arith.constant 0 : i32
    %c0_i32_2 = arith.constant 0 : i32
    return %c0_i32, %c0_i32_0, %c0_i32_1 : i32, i32, i32
  }
  func.func @transform_9(%arg0: i32, %arg1: i32) -> (i32, i32) {
    %c0_i32 = arith.constant 0 : i32
    %c0_i32_0 = arith.constant 0 : i32
    %c0_i32_1 = arith.constant 0 : i32
    return %c0_i32, %c0_i32_0 : i32, i32
  }
}

</mosaic_0001>

<bundles_post_ra>
// kernel: tpu_custom_call.1
= control target key start
LH: loop header
LB: loop body
LE: loop exit
PB: predicated region body
PF: predicated region fallthrough
CT: control target
= control target key end

     0   :  { %14 = vsyncpa [#allocation6], 0  ;;  %s1499_s30 = smov 0   ;;  %s1501_s10 = smov 0   ;;  %s1782_s0 = inlined_call_operand.vmem [shape: s32[1,128], index: 0, kind: input, shape index: {}]   ;;  %s1783_s1 = inlined_call_operand.vmem [shape: bf16[128,33], index: 1, kind: input, shape index: {}]   ;;  %s1784_s2 = inlined_call_operand.vmem [shape: bf16[2,1,32], index: 2, kind: input, shape index: {}]   ;;  %s1785_s3 = inlined_call_operand.vmem [shape: bf16[2,1,33], index: 3, kind: input, shape index: {}]   ;;  %s1786_s4 = inlined_call_operand.vmem [shape: f32[2,1,1], index: 4, kind: input, shape index: {}]   ;;  %s1787_s5 = inlined_call_operand.vmem [shape: bf16[2,32,32], index: 5, kind: input, shape index: {}]   ;;  %s1788_s6 = inlined_call_operand.vmem [shape: f32[2,1,32], index: 6, kind: input, shape index: {}]   ;;  %s1789_s7 = inlined_call_operand.vmem [shape: bf16[2,64,128], index: 7, kind: input, shape index: {}]   ;;  %s1790_s8 = inlined_call_operand.vmem [shape: f32[2,1,128], index: 8, kind: input, shape index: {}]   ;;  %s1791_s9 = inlined_call_operand.hbm [shape: f32[8,32], index: 9, kind: output, shape index: {}]  }
   0x1   :  { %s1503_s11 = smov 0  }
   0x2 LB: > { %s1121_s12 = sadd.s32 4294967295, %s1432_s11   ;;  %s32_s13 = sadd.s32 1, %s1428_s10  ;;  %s1432_s11 = sphi %s1503_s11, %s20_s11   ;;  %s1428_s10 = sphi %s1501_s10, %s1796_s10   ;;  %s1424_s30 = sphi %s1499_s30, %s1795_s30  }
   0x3   : > { %p34_p0 = scmp.ge.s32.totalorder %s32_s13, 3  ;;  %p1125_p1 = scmp.ge.s32.totalorder %s1432_s11, 1 }
   0x4   : > { %p304_p2 = scmp.lt.s32.totalorder %s1432_s11, 4 }
   0x5   : > { %s1798_s13 = smov (%p34_p0, %s32_s13), 0 }
   0x6   : > { %p305_p3 = pnand %p1125_p1, %p304_p2 }
   0x7   : > { %p348_p4 = scmp.eq.s32.totalorder (!%p305_p3), %s1424_s30, 0 }
   0x8   : > { %308 = sbr.rel (%p305_p3) target bundleno = 2353 (0x931), region = 56 }
   0xd   : > { %353 = sbr.rel (!%p348_p4) target bundleno = 18 (0x12), region = 60  ;;  %vm354_vm0 = vcmask (%p348_p4), 269312   ;;  %vm356_vm1 = vcmask (%p348_p4), 7168   ;;  %v1434_v0 = vmov (%p348_p4), 0.0   ;;  %v1435_v1 = vmov (%p348_p4), -1e+30  }
   0xe   : > { %355 = vst.msk [vmem:[#allocation2] sm:$0xff] (%p348_p4), %vm354_vm0, %v1434_v0 }
   0xf   : > { %357 = vst.msk [vmem:[#allocation3] sm:$0xff] (%p348_p4), %vm356_vm1, %v1435_v1 }
  0x12 PF: > { %v358_v2 = vld [vmem:[%s1782_s0] sm:$0x1]  ;;  %v359_v3 = vlaneseq  ;;  %v1532_v5 = vld [vmem:[%s1783_s1 + $0x4] sm:$0xf]  ;;  %v1537_v6 = vld [vmem:[%s1783_s1 + $0x8] sm:$0xf] }
  0x13   : > { %v1527_v4 = vld [vmem:[%s1783_s1] sm:$0xf]  ;;  %vm369_vm2 = vcmp.ge.s32.totalorder %v358_v2, 0  ;;  %v1436_v8 = vmov 0.0   ;;  %v1544_v10 = vld [vmem:[%s1783_s1 + $0xc] sm:$0xf] }
  0x14   : > { %v360_v7 = vshrl.u32 %v359_v3, 7  ;;  %v1539_v9 = vsel %vm369_vm2, 1.0, %v1436_v8  ;;  %v1549_v11 = vld [vmem:[%s1783_s1 + $0x10] sm:$0xf]  ;;  %v1554_v12 = vld [vmem:[%s1783_s1 + $0x14] sm:$0xf] }
  0x15   : > { %v1559_v13 = vld [vmem:[%s1783_s1 + $0x18] sm:$0xf]  ;;  %v1564_v14 = vld [vmem:[%s1783_s1 + $0x1c] sm:$0xf]  ;;  %v1571_v16 = vld [vmem:[%s1783_s1 + $0x20] sm:$0xf] }
  0x16   : > { %v1566_v15 = vsub.s32 0, %v360_v7  ;;  %v1576_v17 = vld [vmem:[%s1783_s1 + $0x24] sm:$0xf]  ;;  %v1581_v18 = vld [vmem:[%s1783_s1 + $0x28] sm:$0xf]  ;;  %p1129_p5 = scmp.ne.s32.totalorder %s1424_s30, 0 }
  0x17   : > { %v1586_v19 = vld [vmem:[%s1783_s1 + $0x2c] sm:$0xf]  ;;  %v1591_v20 = vld [vmem:[%s1783_s1 + $0x30] sm:$0xf]  ;;  %v1597_v22 = vld [vmem:[%s1783_s1 + $0x34] sm:$0xf] }
  0x18   : > { %v364_v21 = vrot.slane %v358_v2, %v1566_v15  ;;  %v1602_v23 = vld [vmem:[%s1783_s1 + $0x38] sm:$0xf]  ;;  %v1607_v24 = vld [vmem:[%s1783_s1 + $0x3c] sm:$0xf]  ;;  %390 = sbr.rel (%p1129_p5) target bundleno = 267 (0x10b), region = 64 }
  0x1a   : > { %vm1609_vm3 = vcmp.eq.s32.totalorder %v360_v7, %v364_v21 }
  0x1b   : > { %v1127_v26 = vsel %vm1609_vm3, 1.0, %v1436_v8 }
  0x1c   : > { %v1615_v27 = vpack.c.bf16 %v1127_v26, %v1127_v26 }
  0x1d   : > { %v1137_v28 = vcombine.low %v1602_v23, %v1607_v24  ;;  %v1437_v29 = vmov 0.0   ;;  %v1136_v30 = vcombine.low %v1591_v20, %v1597_v22  ;;  %vm1438_vm4 = vmmov 0   ;;  %vm1138_vm5 = vmpackc.low %vm1609_vm3, %vm1609_vm3  ;;  %v391_v38 = vld [vmem:[#allocation2] sm:$0xff] }
  0x1e   : > { %1217 = vmatprep.subr.bf16.mxu0 %v1437_v29  ;;  %1233 = vmatprep.mubr.msk.bf16.mxu0 %vm1438_vm4, %v1437_v29  ;;  %v1135_v31 = vcombine.low %v1581_v18, %v1586_v19  ;;  %v1134_v32 = vcombine.low %v1571_v16, %v1576_v17  ;;  %v1133_v33 = vcombine.low %v1559_v13, %v1564_v14  ;;  %v1439_v37 = vmov 1.0|1.0  }
  0x1f   : > { %1218 = vmatpush3.bf16.msra.mxu0 %v1137_v28  ;;  %v1132_v34 = vcombine.low %v1549_v11, %v1554_v12  ;;  %v1131_v35 = vcombine.low %v1537_v6, %v1544_v10  ;;  %v1130_v36 = vcombine.low %v1527_v4, %v1532_v5  ;;  %vm481_vm6 = vcmask 269312  }
  0x20   : > { %1219 = vmatprep.subr.bf16.mxu0 %v1437_v29  ;;  %vm487_vm7 = vcmask 261120  }
  0x23   : > { %1220 = vmatpush3.bf16.msra.mxu0 %v1136_v30 }
  0x24   : > { %1221 = vmatprep.subr.bf16.mxu0 %v1437_v29 }
  0x27   : > { %1222 = vmatpush3.bf16.msra.mxu0 %v1135_v31 }
  0x28   : > { %1223 = vmatprep.subr.bf16.mxu0 %v1437_v29 }
  0x2b   : > { %1224 = vmatpush3.bf16.msra.mxu0 %v1134_v32 }
  0x2c   : > { %1225 = vmatprep.subr.bf16.mxu0 %v1437_v29 }
  0x2f   : > { %1226 = vmatpush3.bf16.msra.mxu0 %v1133_v33 }
  0x30   : > { %1227 = vmatprep.subr.bf16.mxu0 %v1437_v29 }
  0x33   : > { %1228 = vmatpush3.bf16.msra.mxu0 %v1132_v34 }
  0x34   : > { %1229 = vmatprep.subr.bf16.mxu0 %v1437_v29 }
  0x37   : > { %1230 = vmatpush3.bf16.msra.mxu0 %v1131_v35 }
  0x38   : > { %1231 = vmatprep.subr.bf16.mxu0 %v1437_v29 }
  0x3b   : > { %1232 = vmatpush3.bf16.msra.mxu0 %v1130_v36 }
  0x3e   : > { %1234 = vmatmul.mubr.msk.bf16.vlgmr.msra.gmra.mxu0 %vm1138_vm5, %v1439_v37 }
  0xfe   : > { %v474_v39 = vpop.f32.mrf.mxu0 }
  0xff   : > { %v480_v40 = vadd.f32 %v474_v39, %v391_v38 }
 0x100   : > { %v1235_v41 = vpop.f32.mrf.mxu0 }
 0x101   : > { %482 = vst.msk [vmem:[#allocation2] sm:$0xff] %vm481_vm6, %v480_v40 }
 0x102   : > { %v477_v42 = vpop.f32.mrf.mxu0 }
 0x104   : > { %v1236_v43 = vpop.f32.mrf.mxu0 }
 0x108   : > { %v486_v44 = vld [vmem:[#allocation2] sm:$0xff] }
 0x109   : > { %488 = vst.msk [vmem:[#allocation4] sm:$0xff] %vm487_vm7, %v486_v44 }
 0x10a   : > { %489 = vst.msk [vmem:[#allocation2] sm:$0xff] %vm481_vm6, %v1437_v29 }
 0x10b PF: > { %p1140_p6 = scmp.le.s32.totalorder %s1424_s30, 0 }
 0x10c   : > { %s1641_s16 = sadd.s32 (!%p1140_p6), 4294967295, %s1424_s30  ;;  %s1445_s14 = smov (!%p1140_p6), 32  }
 0x10d   : > { %493 = sbr.rel (%p1140_p6) target bundleno = 2338 (0x922), region = 72  ;;  %s500_s19 = scalar_lea.vmem (!%p1140_p6), %s1786_s4, %s1641_s16 }
 0x10e   : > { %s497_s22 = scalar_lea.vmem (!%p1140_p6), %s1784_s2, %s1641_s16  ;;  %s607_s25 = scalar_lea.vmem (!%p1140_p6), %s1785_s3, %s1641_s16 }
 0x10f   : > { %s1176_s26 = sshll.u32 (!%p1140_p6), %s1641_s16, 4  ;;  %s1177_s15 = sshll.u32 (!%p1140_p6), %s1641_s16, 5 }
 0x110   : > { %s838_s29 = scalar_lea.vmem (!%p1140_p6), %s1787_s5, %s1176_s26  ;;  %s1446_s26 = smov (!%p1140_p6), 64  }
 0x111   : > { %p1170_p7 = scmp.ne.s32.totalorder (!%p1140_p6), %s1424_s30, 2 }
 0x112   : > { %v1638_v45 = vld [vmem:[#allocation4] sm:$0xff]  ;;  %v1440_v46 = vmov 0.0   ;;  %vm1441_vm8 = vmmov 0   ;;  %vm511_vm9 = vcmask 261120   ;;  %v1442_v48 = vmov 0   ;;  %v734_v40 = vld [vmem:[#allocation3] sm:$0xff] }
 0x113   : > { %1237 = vmatprep.subr.bf16.mxu0 %v1440_v46  ;;  %v496_v47 = vmax.f32 %v1638_v45, 0.0  ;;  %1239 = vmatprep.mubr.msk.bf16.mxu0 %vm1441_vm8, %v1440_v46  ;;  %v501_v49 = vld [vmem:[%s500_s19] sm:$0x1]  ;;  %vm563_vm10 = vcmask 1043456   ;;  %v1151_v54 = vcombine.low %v1602_v23, %v1607_v24  ;;  %v1150_v55 = vcombine.low %v1591_v20, %v1597_v22  ;;  %s920_s19 = scalar_lea.vmem %s1789_s7, %s1177_s15 }
 0x114   : > { %1354 = vset.pattern.permute.xlu0 %v1442_v48  ;;  %1243 = vmatprep.subr.bf16.mxu1 %v1440_v46  ;;  %v498_v52 = vld [vmem:[%s497_s22] sm:$0x1]  ;;  %v565_v53 = vsel %vm563_vm10, %v1615_v27, 0  ;;  %v1149_v56 = vcombine.low %v1581_v18, %v1586_v19  ;;  %v1148_v57 = vcombine.low %v1571_v16, %v1576_v17  ;;  %v1147_v58 = vcombine.low %v1559_v13, %v1564_v14  ;;  %s843_s22 = scalar_lea.vmem %s1788_s6, %s1641_s16 }
 0x115   : > { %v499_v50 = vpack.c.bf16 %v496_v47, %v496_v47  ;;  %504 = vperm.xlu0 %1354, %v501_v49   ;;  %1245 = vmatprep.mubr.msk.bf16.mxu1 %vm1441_vm8, %v1440_v46  ;;  %v1146_v59 = vcombine.low %v1549_v11, %v1554_v12  ;;  %v1145_v60 = vcombine.low %v1537_v6, %v1544_v10  ;;  %vm649_vm11 = vcmask 269312   ;;  %v608_v16 = vld [vmem:[%s607_s25] sm:$0x1]  ;;  %s929_s25 = scalar_lea.vmem %s1790_s8, %s1641_s16  ;;  %s1447_s16 = smov 96  }
 0x116   : > { %1355 = vset.pattern.permute.xlu1 %v1442_v48  ;;  %1244 = vmatpush3.bf16.msra.mxu1 %v565_v53  ;;  %v1144_v61 = vcombine.low %v1527_v4, %v1532_v5  ;;  %vm559_vm12 = vcmask 64512   ;;  %v675_v6 = vsel %vm649_vm11, %v1151_v54, 0  ;;  %v672_v4 = vsel %vm649_vm11, %v1150_v55, 0 }
 0x117   : > { %v516_v51 = vsel %vm511_vm9, %v499_v50, 0  ;;  %1249 = vmatprep.subr.bf16.mxu1 %v1440_v46  ;;  %v669_v5 = vsel %vm649_vm11, %v1149_v56, 0  ;;  %v666_v10 = vsel %vm649_vm11, %v1148_v57, 0  ;;  %v663_v11 = vsel %vm649_vm11, %v1147_v58, 0 }
 0x118   : > { %1238 = vmatpush3.bf16.xpose.msra.mxu0 %v516_v51  ;;  %v660_v12 = vsel %vm649_vm11, %v1146_v59, 0  ;;  %v657_v13 = vsel %vm649_vm11, %v1145_v60, 0  ;;  %v654_v14 = vsel %vm649_vm11, %v1144_v61, 0  ;;  %vm821_vm13 = vcmask 7168  }
 0x119   : > { %1269 = vmatprep.subr.bf16.mxu0 %v1440_v46  ;;  %v1443_v44 = vmov -1e+30   ;;  %vm961_vm15 = vcmask 523264  }
 0x11f   : > { %1240 = vmatmul.mubr.msk.bf16.vlgmr.msra.gmra.mxu0 %vm511_vm9, %v498_v52 }
 0x120   : > { %1285 = vmatprep.mubr.msk.bf16.mxu0 %vm1441_vm8, %v1440_v46  ;;  %1270 = vmatpush3.bf16.msra.mxu0 %v1151_v54 }
 0x121   : > { %1271 = vmatprep.subr.bf16.mxu0 %v1440_v46 }
 0x124   : > { %1272 = vmatpush3.bf16.msra.mxu0 %v1150_v55 }
 0x125   : > { %1273 = vmatprep.subr.bf16.mxu0 %v1440_v46 }
 0x128   : > { %1274 = vmatpush3.bf16.msra.mxu0 %v1149_v56 }
 0x129   : > { %1275 = vmatprep.subr.bf16.mxu0 %v1440_v46 }
 0x12c   : > { %1276 = vmatpush3.bf16.msra.mxu0 %v1148_v57 }
 0x12d   : > { %1277 = vmatprep.subr.bf16.mxu0 %v1440_v46 }
 0x130   : > { %1278 = vmatpush3.bf16.msra.mxu0 %v1147_v58 }
 0x131   : > { %1279 = vmatprep.subr.bf16.mxu0 %v1440_v46 }
 0x134   : > { %1280 = vmatpush3.bf16.msra.mxu0 %v1146_v59 }
 0x135   : > { %1281 = vmatprep.subr.bf16.mxu0 %v1440_v46 }
 0x138   : > { %1282 = vmatpush3.bf16.msra.mxu0 %v1145_v60 }
 0x139   : > { %1283 = vmatprep.subr.bf16.mxu0 %v1440_v46 }
 0x13c   : > { %1284 = vmatpush3.bf16.msra.mxu0 %v1144_v61 }
 0x13d   : > { %1289 = vmatprep.subr.bf16.mxu0 %v1440_v46 }
 0x190   : > { %v505_v62 = vpop.permute.xlu0 %504 }
 0x191   : > { %v510_v63 = vrot.slane %v505_v62, %v1566_v15 }
 0x1df   : > { %v552_v0 = vpop.f32.mrf.mxu0 }
 0x1e0   : > { %v553_v1 = vadd.f32 %v552_v0, %v510_v63  ;;  %v1444_v0 = vmov 32  }
 0x1e1   : > { %v1241_v2 = vpop.f32.mrf.mxu0  ;;  %1357 = vset.pattern.permute.xlu0 %v1444_v0 }
 0x1e2   : > { %v558_v3 = vpack.c.bf16 %v553_v1, %v553_v1  ;;  %v1358_v1 = vld [vmem:[%s838_s29 + $0x8] sm:$0xff]  }
 0x1e3   : > { %v555_v7 = vpop.f32.mrf.mxu0 }
 0x1e4   : > { %1246 = vmatmul.mubr.msk.bf16.vlgmr.msra.gmra.mxu1 %vm559_vm12, %v558_v3 }
 0x1e5   : > { %1250 = vmatpush3.bf16.xpose.msra.mxu1 %v675_v6  ;;  %v1242_v8 = vpop.f32.mrf.mxu0  ;;  %1265 = vmatprep.mubr.msk.bf16.mxu1 %vm1441_vm8, %v1440_v46 }
 0x1e6   : > { %1251 = vmatprep.subr.bf16.mxu1 %v1440_v46 }
 0x1ed   : > { %1252 = vmatpush3.bf16.xpose.msra.mxu1 %v672_v4 }
 0x1ee   : > { %1253 = vmatprep.subr.bf16.mxu1 %v1440_v46 }
 0x1f5   : > { %1254 = vmatpush3.bf16.xpose.msra.mxu1 %v669_v5 }
 0x1f6   : > { %1255 = vmatprep.subr.bf16.mxu1 %v1440_v46 }
 0x1fd   : > { %1256 = vmatpush3.bf16.xpose.msra.mxu1 %v666_v10  ;;  %v1359_v10 = vld [vmem:[%s838_s29] sm:$0xff]  }
 0x1fe   : > { %1257 = vmatprep.subr.bf16.mxu1 %v1440_v46 }
 0x205   : > { %1258 = vmatpush3.bf16.xpose.msra.mxu1 %v663_v11 }
 0x206   : > { %1259 = vmatprep.subr.bf16.mxu1 %v1440_v46 }
 0x20d   : > { %1260 = vmatpush3.bf16.xpose.msra.mxu1 %v660_v12 }
 0x20e   : > { %1261 = vmatprep.subr.bf16.mxu1 %v1440_v46 }
 0x215   : > { %1262 = vmatpush3.bf16.xpose.msra.mxu1 %v657_v13 }
 0x216   : > { %1263 = vmatprep.subr.bf16.mxu1 %v1440_v46 }
 0x21d   : > { %1264 = vmatpush3.bf16.xpose.msra.mxu1 %v654_v14 }
 0x224   : > { %1266 = vmatmul.mubr.msk.bf16.vlgmr.msra.gmra.mxu1 %vm649_vm11, %v608_v16  ;;  %v1360_v16 = vld [vmem:[%s920_s19 + $0x18] sm:$0xff]  }
 0x2a4   : > { %v601_v17 = vpop.f32.mrf.mxu1 }
 0x2a6   : > { %v1247_v18 = vpop.f32.mrf.mxu1 }
 0x2a7   : > { %v1363_v18 = vld [vmem:[%s920_s19] sm:$0xff]  }
 0x2a8   : > { %v604_v19 = vpop.f32.mrf.mxu1 }
 0x2a9   : > { %v1156_v19 = vld [vmem:[%s843_s22] ss:$0 sm:$0xff] }
 0x2aa   : > { %v1248_v20 = vpop.f32.mrf.mxu1 }
 0x2e4   : > { %v711_v21 = vpop.f32.mrf.mxu1 }
 0x2e5   : > { %v712_v22 = vadd.f32 %v711_v21, %v601_v17  ;;  %v1361_v17 = vld [vmem:[%s920_s19 + $0x10] sm:$0xff]  }
 0x2e6   : > { %v1267_v23 = vpop.f32.mrf.mxu1 }
 0x2e7   : > { %v718_v24 = vand.u32 2147483647, %v712_v22  ;;  %v717_v34 = vmax.f32 %v712_v22, 0.0 }
 0x2e8   : > { %v714_v26 = vpop.f32.mrf.mxu1 }
 0x2e9   : > { %v719_v28 = vsub.f32 0.0, %v718_v24 }
 0x2ea   : > { %v1268_v29 = vpop.f32.mrf.mxu1 }
 0x2eb   : > { %v720_v30 = vmul.f32 1.442695, %v719_v28 }
 0x2ed   : > { %1364 = vpow2.f32 %v720_v30 }
 0x2fa   : > { %v1365_v31 = vpop.eup %1364 }
 0x2fb   : > { %v722_v32 = vadd.f32 1.0, %v1365_v31 }
 0x2fd   : > { %1366 = vlog2.f32 %v722_v32 }
 0x30a   : > { %v1367_v33 = vpop.eup %1366 }
 0x30b   : > { %v724_v35 = vmul.f32 0.6931472, %v1367_v33 }
 0x30d   : > { %v725_v36 = vadd.f32 %v724_v35, %v717_v34  ;;  %v1163_v34 = vld [vmem:[%s929_s25] ss:$0 sm:$0xff] }
 0x30f   : > { %v1153_v37 = vadd.f32 -0.6931472, %v725_v36 }
 0x311   : > { %v730_v38 = vrot.slane %v1153_v37, %v1566_v15 }
 0x313   : > { %v731_v39 = vsel %vm1609_vm3, %v730_v38, -1e+30 }
 0x314   : > { %732 = vmax.xlane.f32.xlu0 %v731_v39 }
 0x39d   : > { %v733_v41 = vpop.xlane.xlu0 %732 }
 0x39e   : > { %v735_v42 = vmax.f32 %v734_v40, %v733_v41 }
 0x3a0   : > { %v752_v43 = vsub.f32 %v734_v40, %v735_v42  ;;  %822 = vst.msk [vmem:[#allocation3] sm:$0xff] %vm821_vm13, %v735_v42  ;;  %738 = vperm.xlu1 %1355, %v735_v42  }
 0x3a1   : > { %1036 = vst.msk [vmem:[#allocation3] sm:$0xff] %vm821_vm13, %v1443_v44 }
 0x3a2   : > { %v753_v47 = vmul.f32 1.442695, %v752_v43 }
 0x3a4   : > { %1368 = vpow2.f32 %v753_v47 }
 0x3b1   : > { %v1369_v48 = vpop.eup %1368 }
 0x3b2   : > { %767 = vperm.xlu1 %1355, %v1369_v48  }
 0x3b6   : > { %1356 = vset.pattern.permute.xlu1 %v1444_v0 }
 0x41b   : > { %v739_v49 = vpop.permute.xlu1 %738 }
 0x41c   : > { %v741_v50 = vsel %vm1609_vm3, %v739_v49, 1e+30 }
 0x41d   : > { %v742_v51 = vrot.slane %v741_v50, 4 }
 0x41f   : > { %v743_v52 = vmin.f32 %v741_v50, %v742_v51 }
 0x421   : > { %v744_v53 = vrot.slane %v743_v52, 2 }
 0x423   : > { %v745_v54 = vmin.f32 %v743_v52, %v744_v53 }
 0x425   : > { %v746_v55 = vrot.slane %v745_v54, 1 }
 0x427   : > { %v747_v56 = vmin.f32 %v745_v54, %v746_v55 }
 0x429   : > { %v748_v57 = vsub.f32 %v1153_v37, %v747_v56 }
 0x42b   : > { %v749_v58 = vmul.f32 1.442695, %v748_v57 }
 0x42d   : > { %1370 = vpow2.f32 %v749_v58 }
 0x43a   : > { %v1371_v59 = vpop.eup %1370 }
 0x43b   : > { %v751_v60 = vmul.f32 %v1371_v59, %v1539_v9  ;;  %v764_v9 = vld [vmem:[#allocation2] sm:$0xff] }
 0x43d   : > { %v755_v61 = vpack.c.bf16 %v751_v60, %v751_v60 }
 0x43f   : > { %v757_v62 = vpack.i.b16 %v755_v61, %v755_v61 }
 0x441   : > { %v762_v63 = vrot.slane %v757_v62, %v1566_v15  ;;  %v768_v15 = vpop.permute.xlu1 %767 }
 0x442   : > { %v770_v2 = vmul.f32 %v768_v15, %v764_v9 }
 0x443   : > { %v763_v25 = vmul.bf16 %v762_v63, %v1615_v27 }
 0x445   : > { %1286 = vmatmul.mubr.bf16.vlgmr.msra.gmra.mxu0 %v763_v25 }
 0x446   : > { %1293 = vmatprep.mubr.msk.bf16.mxu0 %vm1441_vm8, %v1440_v46  ;;  %1290 = vmatpush3.bf16.msra.mxu0 %v1358_v1 }
 0x447   : > { %1291 = vmatprep.subr.bf16.mxu0 %v1440_v46 }
 0x44a   : > { %1292 = vmatpush3.bf16.msra.mxu0 %v1359_v10 }
 0x44b   : > { %1297 = vmatprep.subr.bf16.mxu0 %v1440_v46 }
 0x505   : > { %v813_v27 = vpop.f32.mrf.mxu0 }
 0x506   : > { %v819_v3 = vadd.f32 %v813_v27, %v770_v2 }
 0x507   : > { %v1287_v6 = vpop.f32.mrf.mxu0 }
 0x508   : > { %820 = vst.msk [vmem:[#allocation2] sm:$0xff] %vm649_vm11, %v819_v3 }
 0x509   : > { %v816_v7 = vpop.f32.mrf.mxu0 }
 0x50b   : > { %v1288_v8 = vpop.f32.mrf.mxu0 }
 0x50f   : > { %v826_v4 = vld [vmem:[#allocation2] sm:$0xff] }
 0x510   : > { %v827_v5 = vmax.f32 %v826_v4, 1e-20  ;;  %1035 = vst.msk [vmem:[#allocation2] sm:$0xff] %vm649_vm11, %v1440_v46 }
 0x512   : > { %1372 = vrcp.f32 %v827_v5 }
 0x51f   : > { %v1373_v11 = vpop.eup %1372 }
 0x520   : > { %831 = vperm.xlu1 %1356, %v1373_v11  }
 0x524   : > { %913 = vrot.lane.b32.xlu1 %v1638_v45, %s1445_s14  ;;  %v1362_v45 = vld [vmem:[%s920_s19 + $0x8] sm:$0xff]  }
 0x59b   : > { %v832_v12 = vpop.permute.xlu1 %831 }
 0x59c   : > { %v834_v13 = vmul.f32 %v832_v12, %v826_v4 }
 0x59e   : > { %v835_v14 = vpack.c.bf16 %v834_v13, %v834_v13 }
 0x59f   : > { %v914_v30 = vpop.permute.xlu1 %913 }
 0x5a0   : > { %1294 = vmatmul.mubr.msk.bf16.vlgmr.msra.gmra.mxu0 %vm511_vm9, %v835_v14 }
 0x5a1   : > { %1305 = vmatprep.mubr.msk.bf16.mxu0 %vm1441_vm8, %v1440_v46  ;;  %1298 = vmatpush3.bf16.msra.mxu0 %v1360_v16 }
 0x5a2   : > { %1299 = vmatprep.subr.bf16.mxu0 %v1440_v46 }
 0x5a5   : > { %1300 = vmatpush3.bf16.msra.mxu0 %v1361_v17 }
 0x5a6   : > { %1301 = vmatprep.subr.bf16.mxu0 %v1440_v46 }
 0x5a9   : > { %1302 = vmatpush3.bf16.msra.mxu0 %v1362_v45 }
 0x5aa   : > { %1303 = vmatprep.subr.bf16.mxu0 %v1440_v46 }
 0x5ad   : > { %1304 = vmatpush3.bf16.msra.mxu0 %v1363_v18 }
 0x660   : > { %v900_v20 = vpop.f32.mrf.mxu0 }
 0x661   : > { %v901_v21 = vadd.f32 %v1156_v19, %v900_v20 }
 0x662   : > { %v1295_v22 = vpop.f32.mrf.mxu0 }
 0x663   : > { %v907_v23 = vmin.f32 %v901_v21, 0.0  ;;  %vm906_vm14 = vcmp.gt.f32.partialorder %v901_v21, 0.0 }
 0x664   : > { %v903_v24 = vpop.f32.mrf.mxu0 }
 0x665   : > { %v908_v26 = vmul.f32 1.442695, %v907_v23 }
 0x666   : > { %v1296_v28 = vpop.f32.mrf.mxu0 }
 0x667   : > { %1374 = vpow2.f32 %v908_v26 }
 0x674   : > { %v1375_v29 = vpop.eup %1374 }
 0x675   : > { %v1160_v31 = vadd.f32 -1.0, %v1375_v29 }
 0x677   : > { %v911_v46 = vsel %vm906_vm14, %v901_v21, %v1160_v31 }
 0x678   : > { %v916_v32 = vsel %vm511_vm9, %v911_v46, %v914_v30 }
 0x679   : > { %v917_v33 = vpack.c.bf16 %v916_v32, %v916_v32 }
 0x67b   : > { %1306 = vmatmul.mubr.msk.bf16.vlgmr.msra.gmra.mxu0 %vm961_vm15, %v917_v33 }
 0x73b   : > { %v999_v35 = vpop.f32.mrf.mxu0 }
 0x73c   : > { %v1000_v36 = vadd.f32 %v1163_v34, %v999_v35 }
 0x73d   : > { %v1307_v37 = vpop.f32.mrf.mxu0 }
 0x73e   : > { %1012 = vrot.lane.b32.xlu1 %v1000_v36, %s1445_s14  ;;  %v1169_v40 = vmul.f32 -1.442695, %v1000_v36 }
 0x73f   : > { %v1002_v38 = vpop.f32.mrf.mxu0 }
 0x740   : > { %1376 = vpow2.f32 %v1169_v40 }
 0x741   : > { %v1308_v39 = vpop.f32.mrf.mxu0 }
 0x74d   : > { %v1377_v41 = vpop.eup %1376 }
 0x74e   : > { %v1008_v42 = vadd.f32 1.0, %v1377_v41 }
 0x750   : > { %1378 = vrcp.f32 %v1008_v42 }
 0x75d   : > { %v1379_v43 = vpop.eup %1378 }
 0x75e   : > { %v1022_v51 = vsub.f32 1.0, %v1379_v43  ;;  %v1028_v53 = vmul.f32 %v1379_v43, %v914_v30 }
 0x7b0   : > { %v1013_v44 = vpop.permute.xlu1 %1012 }
 0x7b1   : > { %v1015_v47 = vmul.f32 %v1379_v43, %v1013_v44 }
 0x7b3   : > { %1017 = vrot.lane.b32.xlu1 %v1015_v47, %s1446_s26 }
 0x825   : > { %v1018_v48 = vpop.permute.xlu1 %1017 }
 0x826   : > { %v1020_v49 = vadd.f32 %v1018_v48, %v1000_v36 }
 0x828   : > { %1380 = vtanh.f32 %v1020_v49 }
 0x835   : > { %v1381_v50 = vpop.eup %1380 }
 0x836   : > { %1024 = vrot.lane.b32.xlu1 %v1381_v50, %s1447_s16 }
 0x8a8   : > { %v1025_v52 = vpop.permute.xlu1 %1024 }
 0x8a9   : > { %v1027_v54 = vmul.f32 %v1025_v52, %v1022_v51 }
 0x8ab   : > { %v1029_v55 = vadd.f32 %v1028_v53, %v1027_v54 }
 0x8ad   : > { %1031 = vrot.lane.b32.xlu1 %v1029_v55, %s1447_s16 }
 0x91c   : > { %1040 = sbr.rel (%p1170_p7) target bundleno = 2338 (0x922), region = 80 }
 0x91f   : > { %v1032_v56 = vpop.permute.xlu1 %1031 }
 0x920   : > { %1034 = vst.msk [vmem:[#allocation4] sm:$0xff] %vm511_vm9, %v1032_v56 }
 0x921   : > { %1041 = vst.msk [vmem:[#allocation5] sm:$0xff] %vm511_vm9, %v1032_v56 }
 0x922 PF: > { %p1758_p8 = scmp.eq.s32.totalorder %s1121_s12, 2  ;;  %s1448_s28 = smov [#allocation5]  }
 0x923   : > { %s1049_s29 = sshll.u32 %s1448_s28, 4  ;;  %s1050_s29 = int_to_ptr.vmem [resolvable:$true] %s1049_s29 }
 0x924   : > { %s1382_s14 = scalar_lea.vmem %s1050_s29, 128  ;;  %p1389_p12 = scmp.lt.s32.totalorder %s1050_s29, %s1050_s29 }
 0x925   : > { %p1383_p9 = scmp.ne.s32.totalorder %s1050_s29, %s1382_s14  ;;  %p1390_p13 = scmp.lt.s32.totalorder %s1382_s14, %s1382_s14 }
 0x927   : > { %p1384_p10 = pnand %p1383_p9, %p1758_p8  ;;  %p1391_p0 = por %p1390_p13, %p1389_p12 }
 0x929   : > { %p1385_p11 = pneg %p1384_p10 }
 0x92b   : > { %p1392_p1 = pnand %p1391_p0, %p1385_p11 }
 0x92d   : > { %1395 = shalt.err (!%p1392_p1)
}
 0x92e   : > { %1310 = dma.vmem_to_hbm [thread:$0]  (%p1758_p8), %s1050_s29, 128, %s1791_s9, [#allocation6]  }
 0x92f   : > { %1419 = dma.done.wait (%p1758_p8), [#allocation6], 128  }
 0x930   : > { %1421 = vsyncadd (%p1758_p8), [#allocation6], 4294967168 }
 0x931 PF: > { %s20_s11 = sadd.s32 1, %s1432_s11   ;;  %s1795_s30 = smov %s1428_s10 }
 0x932   : > { %p17_p2 = scmp.ge.s32.totalorder %s20_s11, 5   ;;  %s1796_s10 = smov %s1798_s13 }
 0x934   :  { %19 = sbr.rel (!%p17_p2) target bundleno = 2 (0x2), region = 117 }
 0x939   :  { %1062 = vsyncpa [#allocation6], 1 }
 0x93a   :  { %1064 = vsyncpa [#allocation6 + $0x1], 1 }

</bundles_post_ra>
